<compile_context>
chip_gen: v6e
topology: v6e:2x2x1
jax: 0.10.0
libtpu: 0.0.40
codegen_flags: <defaults>
</compile_context>

<pallas_src>
import functools

import jax
import jax.numpy as jnp
from jax.experimental import pallas as pl
from jax.experimental.pallas import tpu as pltpu


# ----------------------------- Pallas kernel --------------------------------
def _token_gat_fused_kernel(*refs, num_hidden, head_num, out_dim, alpha):
    """Fused Token_GAT forward: all hidden layers (all heads, ELU, head mean)
    plus the output GAT layer and final ReLU, entirely in VMEM.

    refs = (h, mask_bias, W_cat_hidden_0 .. W_cat_hidden_{num_hidden-1},
            W_cat_out, out)
      mask_bias      : (N, N) additive bias, 0 where adj>0 else -9e15
      W_cat_hidden_l : (in_dim_l, H*D + 2H) = [W_0|..|W_{H-1}|W@a1_*|W@a2_*]
      W_cat_out      : (prev_dim, D + 2)    = [W | W@a1 | W@a2]
    """
    h_ref, bias_ref = refs[0], refs[1]
    w_hidden_refs = refs[2:2 + num_hidden]
    w_out_ref = refs[2 + num_hidden]
    out_ref = refs[3 + num_hidden]

    N = h_ref.shape[0]
    D = out_dim
    H = head_num
    alpha_f = jnp.float32(alpha)

    mask_bias = bias_ref[...]                       # loaded once, reused everywhere
    h = h_ref[...]

    def masked_softmax(e, *, exact):
        # branch-free LeakyReLU + additive adjacency mask
        logits = jnp.maximum(e, 0.0) + alpha_f * jnp.minimum(e, 0.0) + mask_bias
        logits = logits - jnp.max(logits, axis=-1, keepdims=True)
        p = jnp.exp(logits)
        s = jnp.sum(p, axis=-1, keepdims=True)
        if exact:
            return p / s
        return p * pl.reciprocal(s, approx=True)

    inv_heads = jnp.float32(1.0 / H)

    # Hidden layers: per-head attention, per-head ELU, mean over heads.
    # TODO(synk): training-mode dropout not implemented (eval-mode identity).
    for l in range(num_hidden):
        proj = jnp.dot(h, w_hidden_refs[l][...],
                       preferred_element_type=jnp.float32)       # (N, H*D + 2H)
        base = H * D
        f1_all = proj[:, base:base + H]                           # (N, H)
        f2_t = jnp.transpose(proj[:, base + H:base + 2 * H], (1, 0))  # (H, N)

        atts, bd_rows = [], []
        zeros_nd = jnp.zeros((N, D), jnp.float32)
        for hd in range(H):
            e = f1_all[:, hd:hd + 1] + f2_t[hd:hd + 1, :]         # (N, N)
            atts.append(masked_softmax(e, exact=False))
            Wh = proj[:, hd * D:(hd + 1) * D]                     # (N, D)
            bd_rows.append(jnp.concatenate(
                [Wh if j == hd else zeros_nd for j in range(H)], axis=1))

        att_cat = jnp.concatenate(atts, axis=1)                   # (N, H*N)
        wh_bd = jnp.concatenate(bd_rows, axis=0)                  # (H*N, H*D)

        # All heads' aggregations in ONE MXU matmul.
        heads = jnp.dot(att_cat, wh_bd,
                        preferred_element_type=jnp.float32)       # (N, H*D)
        # Per-head ELU (concat=True).  exp-1 kept (vs expm1) for safe Mosaic
        # lowering; difference is within f32 tolerance near 0.
        heads = jnp.where(heads > 0, heads, jnp.exp(heads) - 1.0)

        acc = heads[:, :D]
        for hd in range(1, H):
            acc = acc + heads[:, hd * D:(hd + 1) * D]
        h = acc * inv_heads                                        # head mean

    # Output GAT layer (single head, concat=False) followed by F.relu.
    proj = jnp.dot(h, w_out_ref[...], preferred_element_type=jnp.float32)  # (N, D+2)
    Wh = proj[:, :D]
    e = proj[:, D:D + 1] + jnp.transpose(proj[:, D + 1:D + 2], (1, 0))
    att = masked_softmax(e, exact=True)
    o = jnp.dot(att, Wh, preferred_element_type=jnp.float32)
    # TODO(synk): at production sizes lane-pad out_dim to a multiple of 128
    #             (slice in the wrapper) so this store is an unmasked vst.
    out_ref[...] = jnp.maximum(o, 0.0).astype(out_ref.dtype)


# ----------------------------- weight packing --------------------------------
def pack_token_gat_params(params):
    """One-time weight packing (call at init, NOT on the per-forward path)."""
    w_cats = []
    for heads in params["hidden"]:
        blocks = [p["W"] for p in heads]
        blocks += [p["W"] @ p["a1"] for p in heads]
        blocks += [p["W"] @ p["a2"] for p in heads]
        w_cats.append(jnp.concatenate(blocks, axis=1))
    po = params["out"]
    w_cat_out = jnp.concatenate(
        [po["W"], po["W"] @ po["a1"], po["W"] @ po["a2"]], axis=1)
    return tuple(w_cats), w_cat_out


def _vmem_limit_bytes():
    """Per-generation VMEM limit: ~3/4 of physical, capped at 100 MiB."""
    try:
        cap = int(pltpu.get_tpu_info().vmem_capacity_bytes)
    except Exception:
        cap = 64 * 1024 * 1024          # conservative (v7x-sized) fallback
    return min((cap * 3) // 4, 100 * 1024 * 1024)


# ----------------------------- wrapper ---------------------------------------
def token_gat_forward(input_feature, adj, w_cats_hidden, w_cat_out, *, alpha=0.2):
    """Whole Token_GAT forward in one pallas_call (everything fits in VMEM)."""
    N = input_feature.shape[0]
    out_dim = w_cat_out.shape[1] - 2
    num_hidden = len(w_cats_hidden)
    head_num = (w_cats_hidden[0].shape[1] // (out_dim + 2)) if num_hidden else 1

    # Only per-call prep: additive adjacency bias (0 where edge, else -9e15).
    mask_bias = jnp.where(adj > 0.0, jnp.float32(0.0), jnp.float32(-9e15))

    kernel = functools.partial(_token_gat_fused_kernel,
                               num_hidden=num_hidden, head_num=head_num,
                               out_dim=out_dim, alpha=alpha)
    vmem = pl.BlockSpec(memory_space=pltpu.MemorySpace.VMEM)
    n_inputs = 2 + num_hidden + 1
    # TODO(synk): v7x has 2 TensorCores; this grid-less call runs on one.  Add
    #             a "parallel" query-row grid axis once flash-style row tiling
    #             lands (attention needs all rows, so tiling implies per-layer
    #             calls or shared-VMEM h).
    return pl.pallas_call(
        kernel,
        out_shape=jax.ShapeDtypeStruct((N, out_dim), jnp.float32),
        in_specs=[vmem] * n_inputs,
        out_specs=vmem,
        compiler_params=pltpu.CompilerParams(
            vmem_limit_bytes=_vmem_limit_bytes()),
    )(input_feature, mask_bias, *w_cats_hidden, w_cat_out)


# ----------------------------- parameters ------------------------------------
def init_token_gat_params(key, in_dim, out_dim, layer_num, head_num):
    """Deterministic synthetic parameters (xavier-ish normal)."""
    params = {"hidden": [], "out": None}
    d = in_dim
    for _ in range(layer_num - 1):
        heads = []
        for _ in range(head_num):
            key, k1, k2 = jax.random.split(key, 3)
            Wk = jax.random.normal(k1, (d, out_dim), jnp.float32) * 0.1
            ak = jax.random.normal(k2, (2 * out_dim, 1), jnp.float32) * 0.1
            heads.append({"W": Wk, "a1": ak[:out_dim], "a2": ak[out_dim:]})
        params["hidden"].append(heads)
        d = out_dim
    key, k1, k2 = jax.random.split(key, 3)
    Wo = jax.random.normal(k1, (d, out_dim), jnp.float32) * 0.1
    ao = jax.random.normal(k2, (2 * out_dim, 1), jnp.float32) * 0.1
    params["out"] = {"W": Wo, "a1": ao[:out_dim], "a2": ao[out_dim:]}
    return params


# --------------------------------- main ---------------------------------------
if __name__ == "__main__":
    key = jax.random.PRNGKey(0)

    N = 8          # number of token nodes
    in_dim = 32
    out_dim = 32
    layer_num = 2
    head_num = 2

    key, kx, ka, kp = jax.random.split(key, 4)
    x = jax.random.normal(kx, (N, in_dim), jnp.float32)

    # random symmetric 0/1 adjacency with self-loops
    a = (jax.random.uniform(ka, (N, N)) > 0.5).astype(jnp.float32)
    adj = jnp.clip(a + a.T + jnp.eye(N, dtype=jnp.float32), 0.0, 1.0)

    params = init_token_gat_params(kp, in_dim, out_dim, layer_num, head_num)
    # One-time packing — deliberately outside the forward call path.
    w_cats_hidden, w_cat_out = pack_token_gat_params(params)

    fwd = jax.jit(token_gat_forward)
    out = fwd(x, adj, w_cats_hidden, w_cat_out)
    jax.block_until_ready(out)
    assert out.shape == (N, out_dim)
    assert bool(jnp.all(jnp.isfinite(out)))
    print("KERNEL_OK")
</pallas_src>

<mosaic_0001>
module attributes {stable_mosaic.version = 11 : i64} {
  func.func @_token_gat_fused_kernel(%arg0: memref<8x32xf32, #tpu.memory_space<vmem>>, %arg1: memref<8x8xf32, #tpu.memory_space<vmem>>, %arg2: memref<32x68xf32, #tpu.memory_space<vmem>>, %arg3: memref<32x34xf32, #tpu.memory_space<vmem>>, %arg4: memref<8x32xf32, #tpu.memory_space<vmem>>) attributes {dimension_semantics = [], scalar_prefetch = 0 : i64, scratch_operands = 0 : i64, tpu.core_type = #tpu.core_type<tc>} {
    %c0 = arith.constant 0 : index
    %c0_0 = arith.constant 0 : index
    %0 = vector.load %arg1[%c0, %c0_0] : memref<8x8xf32, #tpu.memory_space<vmem>>, vector<8x8xf32>
    %c0_1 = arith.constant 0 : index
    %c0_2 = arith.constant 0 : index
    %1 = vector.load %arg0[%c0_1, %c0_2] : memref<8x32xf32, #tpu.memory_space<vmem>>, vector<8x32xf32>
    %c0_3 = arith.constant 0 : index
    %c0_4 = arith.constant 0 : index
    %2 = vector.load %arg2[%c0_3, %c0_4] : memref<32x68xf32, #tpu.memory_space<vmem>>, vector<32x68xf32>
    %cst = arith.constant dense<0.000000e+00> : vector<8x68xf32>
    %3 = tpu.matmul %1, %2, %cst {dimension_numbers = #tpu.dot_dimension_numbers<[1], [0], [0], [1], [0, 0, 1, 1], [], []>} : vector<8x32xf32>, vector<32x68xf32>, vector<8x68xf32> -> vector<8x68xf32>
    %4 = vector.extract_strided_slice %3 {offsets = [0, 64], sizes = [8, 2], strides = [1, 1]} : vector<8x68xf32> to vector<8x2xf32>
    %5 = vector.extract_strided_slice %3 {offsets = [0, 66], sizes = [8, 2], strides = [1, 1]} : vector<8x68xf32> to vector<8x2xf32>
    %6 = tpu.transpose %5, [1, 0] : vector<8x2xf32> -> vector<2x8xf32>
    %cst_5 = arith.constant 0.000000e+00 : f32
    %7 = vector.broadcast %cst_5 : f32 to vector<8x32xf32>
    %8 = vector.extract_strided_slice %4 {offsets = [0, 0], sizes = [8, 1], strides = [1, 1]} : vector<8x2xf32> to vector<8x1xf32>
    %9 = vector.extract_strided_slice %6 {offsets = [0, 0], sizes = [1, 8], strides = [1, 1]} : vector<2x8xf32> to vector<1x8xf32>
    %10 = vector.broadcast %8 : vector<8x1xf32> to vector<8x8xf32>
    %11 = vector.broadcast %9 : vector<1x8xf32> to vector<8x8xf32>
    %12 = arith.addf %10, %11 : vector<8x8xf32>
    %cst_6 = arith.constant 0.000000e+00 : f32
    %13 = vector.broadcast %cst_6 : f32 to vector<8x8xf32>
    %14 = arith.maximumf %12, %13 : vector<8x8xf32>
    %cst_7 = arith.constant 0.000000e+00 : f32
    %15 = vector.broadcast %cst_7 : f32 to vector<8x8xf32>
    %16 = arith.minimumf %12, %15 : vector<8x8xf32>
    %cst_8 = arith.constant 2.000000e-01 : f32
    %17 = vector.broadcast %cst_8 : f32 to vector<8x8xf32>
    %18 = arith.mulf %17, %16 : vector<8x8xf32>
    %19 = arith.addf %14, %18 : vector<8x8xf32>
    %20 = arith.addf %19, %0 : vector<8x8xf32>
    %cst_9 = arith.constant dense<0xFF800000> : vector<8xf32>
    %21 = vector.multi_reduction <maximumf>, %20, %cst_9 [1] : vector<8x8xf32> to vector<8xf32>
    %22 = vector.shape_cast %21 : vector<8xf32> to vector<8x1xf32>
    %23 = vector.broadcast %22 : vector<8x1xf32> to vector<8x8xf32>
    %24 = arith.subf %20, %23 : vector<8x8xf32>
    %25 = math.exp %24 : vector<8x8xf32>
    %cst_10 = arith.constant dense<0.000000e+00> : vector<8xf32>
    %26 = vector.multi_reduction <add>, %25, %cst_10 [1] : vector<8x8xf32> to vector<8xf32>
    %27 = vector.shape_cast %26 : vector<8xf32> to vector<8x1xf32>
    %28 = tpu.reciprocal %27 {approx = true} : vector<8x1xf32> -> vector<8x1xf32>
    %29 = vector.broadcast %28 : vector<8x1xf32> to vector<8x8xf32>
    %30 = arith.mulf %25, %29 : vector<8x8xf32>
    %31 = vector.extract_strided_slice %3 {offsets = [0, 0], sizes = [8, 32], strides = [1, 1]} : vector<8x68xf32> to vector<8x32xf32>
    %32 = tpu.concatenate %31, %7 in 1 : vector<8x32xf32>, vector<8x32xf32> -> vector<8x64xf32>
    %33 = vector.extract_strided_slice %4 {offsets = [0, 1], sizes = [8, 1], strides = [1, 1]} : vector<8x2xf32> to vector<8x1xf32>
    %34 = vector.extract_strided_slice %6 {offsets = [1, 0], sizes = [1, 8], strides = [1, 1]} : vector<2x8xf32> to vector<1x8xf32>
    %35 = vector.broadcast %33 : vector<8x1xf32> to vector<8x8xf32>
    %36 = vector.broadcast %34 : vector<1x8xf32> to vector<8x8xf32>
    %37 = arith.addf %35, %36 : vector<8x8xf32>
    %cst_11 = arith.constant 0.000000e+00 : f32
    %38 = vector.broadcast %cst_11 : f32 to vector<8x8xf32>
    %39 = arith.maximumf %37, %38 : vector<8x8xf32>
    %cst_12 = arith.constant 0.000000e+00 : f32
    %40 = vector.broadcast %cst_12 : f32 to vector<8x8xf32>
    %41 = arith.minimumf %37, %40 : vector<8x8xf32>
    %cst_13 = arith.constant 2.000000e-01 : f32
    %42 = vector.broadcast %cst_13 : f32 to vector<8x8xf32>
    %43 = arith.mulf %42, %41 : vector<8x8xf32>
    %44 = arith.addf %39, %43 : vector<8x8xf32>
    %45 = arith.addf %44, %0 : vector<8x8xf32>
    %cst_14 = arith.constant dense<0xFF800000> : vector<8xf32>
    %46 = vector.multi_reduction <maximumf>, %45, %cst_14 [1] : vector<8x8xf32> to vector<8xf32>
    %47 = vector.shape_cast %46 : vector<8xf32> to vector<8x1xf32>
    %48 = vector.broadcast %47 : vector<8x1xf32> to vector<8x8xf32>
    %49 = arith.subf %45, %48 : vector<8x8xf32>
    %50 = math.exp %49 : vector<8x8xf32>
    %cst_15 = arith.constant dense<0.000000e+00> : vector<8xf32>
    %51 = vector.multi_reduction <add>, %50, %cst_15 [1] : vector<8x8xf32> to vector<8xf32>
    %52 = vector.shape_cast %51 : vector<8xf32> to vector<8x1xf32>
    %53 = tpu.reciprocal %52 {approx = true} : vector<8x1xf32> -> vector<8x1xf32>
    %54 = vector.broadcast %53 : vector<8x1xf32> to vector<8x8xf32>
    %55 = arith.mulf %50, %54 : vector<8x8xf32>
    %56 = vector.extract_strided_slice %3 {offsets = [0, 32], sizes = [8, 32], strides = [1, 1]} : vector<8x68xf32> to vector<8x32xf32>
    %57 = tpu.concatenate %7, %56 in 1 : vector<8x32xf32>, vector<8x32xf32> -> vector<8x64xf32>
    %58 = tpu.concatenate %30, %55 in 1 : vector<8x8xf32>, vector<8x8xf32> -> vector<8x16xf32>
    %59 = tpu.concatenate %32, %57 in 0 : vector<8x64xf32>, vector<8x64xf32> -> vector<16x64xf32>
    %cst_16 = arith.constant dense<0.000000e+00> : vector<8x64xf32>
    %60 = tpu.matmul %58, %59, %cst_16 {dimension_numbers = #tpu.dot_dimension_numbers<[1], [0], [0], [1], [0, 0, 1, 1], [], []>} : vector<8x16xf32>, vector<16x64xf32>, vector<8x64xf32> -> vector<8x64xf32>
    %cst_17 = arith.constant 0.000000e+00 : f32
    %61 = vector.broadcast %cst_17 : f32 to vector<8x64xf32>
    %62 = arith.cmpf ogt, %60, %61 : vector<8x64xf32>
    %63 = math.exp %60 : vector<8x64xf32>
    %cst_18 = arith.constant 1.000000e+00 : f32
    %64 = vector.broadcast %cst_18 : f32 to vector<8x64xf32>
    %65 = arith.subf %63, %64 : vector<8x64xf32>
    %66 = arith.select %62, %60, %65 : vector<8x64xi1>, vector<8x64xf32>
    %67 = vector.extract_strided_slice %66 {offsets = [0, 0], sizes = [8, 32], strides = [1, 1]} : vector<8x64xf32> to vector<8x32xf32>
    %68 = vector.extract_strided_slice %66 {offsets = [0, 32], sizes = [8, 32], strides = [1, 1]} : vector<8x64xf32> to vector<8x32xf32>
    %69 = arith.addf %67, %68 : vector<8x32xf32>
    %cst_19 = arith.constant 5.000000e-01 : f32
    %70 = vector.broadcast %cst_19 : f32 to vector<8x32xf32>
    %71 = arith.mulf %69, %70 : vector<8x32xf32>
    %c0_20 = arith.constant 0 : index
    %c0_21 = arith.constant 0 : index
    %72 = vector.load %arg3[%c0_20, %c0_21] : memref<32x34xf32, #tpu.memory_space<vmem>>, vector<32x34xf32>
    %cst_22 = arith.constant dense<0.000000e+00> : vector<8x34xf32>
    %73 = tpu.matmul %71, %72, %cst_22 {dimension_numbers = #tpu.dot_dimension_numbers<[1], [0], [0], [1], [0, 0, 1, 1], [], []>} : vector<8x32xf32>, vector<32x34xf32>, vector<8x34xf32> -> vector<8x34xf32>
    %74 = vector.extract_strided_slice %73 {offsets = [0, 0], sizes = [8, 32], strides = [1, 1]} : vector<8x34xf32> to vector<8x32xf32>
    %75 = vector.extract_strided_slice %73 {offsets = [0, 32], sizes = [8, 1], strides = [1, 1]} : vector<8x34xf32> to vector<8x1xf32>
    %76 = vector.extract_strided_slice %73 {offsets = [0, 33], sizes = [8, 1], strides = [1, 1]} : vector<8x34xf32> to vector<8x1xf32>
    %77 = tpu.transpose %76, [1, 0] : vector<8x1xf32> -> vector<1x8xf32>
    %78 = vector.broadcast %75 : vector<8x1xf32> to vector<8x8xf32>
    %79 = vector.broadcast %77 : vector<1x8xf32> to vector<8x8xf32>
    %80 = arith.addf %78, %79 : vector<8x8xf32>
    %cst_23 = arith.constant 0.000000e+00 : f32
    %81 = vector.broadcast %cst_23 : f32 to vector<8x8xf32>
    %82 = arith.maximumf %80, %81 : vector<8x8xf32>
    %cst_24 = arith.constant 0.000000e+00 : f32
    %83 = vector.broadcast %cst_24 : f32 to vector<8x8xf32>
    %84 = arith.minimumf %80, %83 : vector<8x8xf32>
    %cst_25 = arith.constant 2.000000e-01 : f32
    %85 = vector.broadcast %cst_25 : f32 to vector<8x8xf32>
    %86 = arith.mulf %85, %84 : vector<8x8xf32>
    %87 = arith.addf %82, %86 : vector<8x8xf32>
    %88 = arith.addf %87, %0 : vector<8x8xf32>
    %cst_26 = arith.constant dense<0xFF800000> : vector<8xf32>
    %89 = vector.multi_reduction <maximumf>, %88, %cst_26 [1] : vector<8x8xf32> to vector<8xf32>
    %90 = vector.shape_cast %89 : vector<8xf32> to vector<8x1xf32>
    %91 = vector.broadcast %90 : vector<8x1xf32> to vector<8x8xf32>
    %92 = arith.subf %88, %91 : vector<8x8xf32>
    %93 = math.exp %92 : vector<8x8xf32>
    %cst_27 = arith.constant dense<0.000000e+00> : vector<8xf32>
    %94 = vector.multi_reduction <add>, %93, %cst_27 [1] : vector<8x8xf32> to vector<8xf32>
    %95 = vector.shape_cast %94 : vector<8xf32> to vector<8x1xf32>
    %96 = vector.broadcast %95 : vector<8x1xf32> to vector<8x8xf32>
    %97 = arith.divf %93, %96 : vector<8x8xf32>
    %cst_28 = arith.constant dense<0.000000e+00> : vector<8x32xf32>
    %98 = tpu.matmul %97, %74, %cst_28 {dimension_numbers = #tpu.dot_dimension_numbers<[1], [0], [0], [1], [0, 0, 1, 1], [], []>} : vector<8x8xf32>, vector<8x32xf32>, vector<8x32xf32> -> vector<8x32xf32>
    %cst_29 = arith.constant 0.000000e+00 : f32
    %99 = vector.broadcast %cst_29 : f32 to vector<8x32xf32>
    %100 = arith.maximumf %98, %99 : vector<8x32xf32>
    %c0_30 = arith.constant 0 : index
    %c0_31 = arith.constant 0 : index
    %101 = vector.load %arg4[%c0_30, %c0_31] : memref<8x32xf32, #tpu.memory_space<vmem>>, vector<8x32xf32>
    tpu.vector_store %arg4[%c0_30, %c0_31], %100 {strides = array<i32>} : memref<8x32xf32, #tpu.memory_space<vmem>>, vector<8x32xf32>,
    return
  }
}

</mosaic_0001>

<bundles_post_ra>
// kernel: token_gat_forward.1
= control target key start
LH: loop header
LB: loop body
LE: loop exit
PB: predicated region body
PF: predicated region fallthrough
CT: control target
= control target key end

     0   :  { %9 = vsyncpa [#allocation3], 0  ;;  %s788_s0 = inlined_call_operand.vmem [shape: f32[8,32], index: 0, kind: input, shape index: {}]   ;;  %s789_s1 = inlined_call_operand.vmem [shape: f32[8,8], index: 1, kind: input, shape index: {}]   ;;  %s790_s2 = inlined_call_operand.hbm [shape: f32[32,68], index: 2, kind: input, shape index: {}]   ;;  %s791_s3 = inlined_call_operand.hbm [shape: f32[32,34], index: 3, kind: input, shape index: {}]   ;;  %s792_s4 = inlined_call_operand.hbm [shape: f32[8,32], index: 4, kind: output, shape index: {}]  }
   0x1   :  { %10 = vsyncpa [#allocation6], 0 }
   0x2   :  { %11 = vsyncpa [#allocation4], 0  ;;  %s687_s15 = smov [#allocation2]  }
   0x3   :  { %s21_s16 = sshll.u32 %s687_s15, 4  ;;  %s22_s16 = int_to_ptr.vmem [resolvable:$true] %s21_s16 }
   0x4   :  { %s629_s17 = scalar_lea.vmem %s22_s16, 512  ;;  %p634_p1 = scmp.lt.s32.totalorder %s22_s16, %s22_s16 }
   0x5   :  { %p630_p0 = scmp.ne.s32.totalorder %s22_s16, %s629_s17  ;;  %p635_p2 = scmp.lt.s32.totalorder %s629_s17, %s629_s17 }
   0x7   :  { %p636_p3 = por %p635_p2, %p634_p1 }
   0x9   :  { %p637_p4 = pnand %p636_p3, %p630_p0 }
   0xb   :  { %640 = shalt.err (!%p637_p4)
}
   0xc   :  { %s688_s18 = smov 128   ;;  %s689_s19 = smov 8  }
   0xd   :  { %27 = dma.hbm_to_vmem [thread:$0]  %s790_s2, 512, %s22_s16, [#allocation3], %s688_s18, %s688_s18, %s689_s19  }
   0xe   :  { %s690_s22 = smov [#allocation5]  }
   0xf   :  { %s33_s23 = sshll.u32 %s690_s22, 4  ;;  %s34_s23 = int_to_ptr.vmem [resolvable:$true] %s33_s23 }
  0x10   :  { %s649_s24 = scalar_lea.vmem %s34_s23, 512  ;;  %p654_p6 = scmp.lt.s32.totalorder %s34_s23, %s34_s23 }
  0x11   :  { %p650_p5 = scmp.ne.s32.totalorder %s34_s23, %s649_s24  ;;  %p655_p7 = scmp.lt.s32.totalorder %s649_s24, %s649_s24 }
  0x13   :  { %p656_p8 = por %p655_p7, %p654_p6 }
  0x15   :  { %p657_p9 = pnand %p656_p8, %p650_p5 }
  0x17   :  { %660 = shalt.err (!%p657_p9)
}
  0x18   :  { %39 = dma.hbm_to_vmem [thread:$0]  %s791_s3, 512, %s34_s23, [#allocation6], %s688_s18, %s688_s18, %s689_s19  }
  0x19   :  { %681 = dma.done.wait [#allocation3], 512  }
  0x1a   :  { %682 = vsyncadd [#allocation3], 4294966784 }
  0x1b   :  { %683 = dma.done.wait [#allocation6], 512  }
  0x1c   :  { %684 = vsyncadd [#allocation6], 4294966784  ;;  %v691_v0 = vmov 0.0   ;;  %vm692_vm0 = vmmov 0   ;;  %v51_v1 = vld [vmem:[#allocation2 + $0x18] sm:$0xff]  ;;  %v50_v2 = vld [vmem:[#allocation2 + $0x10] sm:$0xff]  ;;  %v166_v11 = vlaneseq }
  0x1d   :  { %557 = vmatprep.subr.mxu0 %v691_v0  ;;  %565 = vmatprep.mubr.msk.f32.mxu0 %vm692_vm0, %v691_v0  ;;  %v49_v3 = vld [vmem:[#allocation2 + $0x8] sm:$0xff]  ;;  %v48_v4 = vld [vmem:[#allocation2] sm:$0xff]  ;;  %vm52_vm1 = vcmask 261120   ;;  %v693_v6 = vmov 65   ;;  %s694_s27 = smov 62   ;;  %v695_v10 = vmov 64  }
  0x1e   :  { %568 = vmatprep.subr.mxu1 %v691_v0  ;;  %572 = vmatprep.mubr.msk.f32.mxu1 %vm692_vm0, %v691_v0  ;;  %v47_v5 = vld [vmem:[%s788_s0] sm:$0xff]  ;;  %vm535_vm2 = vmneg %vm52_vm1  ;;  %v753_v12 = vshrl.u32 %v166_v11, 7  ;;  %vm176_vm3 = vcmask 64512   ;;  %vm220_vm4 = vcmask 130048   ;;  %v308_v53 = vld [vmem:[#allocation5 + $0x18] sm:$0xff]  ;;  %s698_s29 = smov 95  }
  0x1f   :  { %558 = vmatpush3.msra.mxu0 %v51_v1  ;;  %604 = vset.pattern.permute.xlu0 %v693_v6  ;;  %v759_v21 = vld [vmem:[%s789_s1] sm:$0xff]  ;;  %v307_v54 = vld [vmem:[#allocation5 + $0x10] sm:$0xff]  ;;  %v306_v58 = vld [vmem:[#allocation5 + $0x8] sm:$0xff]  ;;  %s696_s1 = smov 96   ;;  %s699_s30 = smov [#allocation7]  }
  0x20   :  { %559 = vmatprep.subr.mxu0 %v691_v0  ;;  %v195_v13 = vsub.s32 1, %v753_v12  ;;  %v168_v25 = vsub.s32 0, %v753_v12  ;;  %v305_v59 = vld [vmem:[#allocation5] sm:$0xff]  ;;  %s524_s5 = sshll.u32 %s699_s30, 4  ;;  %s525_s5 = int_to_ptr.vmem [resolvable:$true] %s524_s5 }
  0x21   :  { %560 = vmatpush3.msra.mxu0 %v50_v2  ;;  %s661_s6 = scalar_lea.vmem %s525_s5, 128  ;;  %p666_p11 = scmp.lt.s32.totalorder %s525_s5, %s525_s5 }
  0x22   :  { %561 = vmatprep.subr.mxu0 %v691_v0  ;;  %p662_p10 = scmp.ne.s32.totalorder %s525_s5, %s661_s6  ;;  %p667_p12 = scmp.lt.s32.totalorder %s661_s6, %s661_s6 }
  0x23   :  { %562 = vmatpush3.msra.mxu0 %v49_v3  ;;  %v697_v3 = vmov 32  }
  0x24   :  { %563 = vmatprep.subr.mxu0 %v691_v0  ;;  %p668_p13 = por %p667_p12, %p666_p11 }
  0x25   :  { %564 = vmatpush3.msra.mxu0 %v48_v4 }
  0x26   :  { %566 = vmatmul.mubr.msk.f32.vlgmr.msra.gmra.mxu0 %vm52_vm1, %v47_v5  ;;  %586 = vmatprep.subr.mxu0 %v691_v0  ;;  %p669_p0 = pnand %p668_p13, %p662_p10 }
  0x27   :  { %588 = vmatprep.mubr.msk.f32.mxu0 %vm692_vm0, %v691_v0 }
  0xe6   :  { %v122_v7 = vpop.f32.mrf.mxu0 }
  0xe7   :  { %127 = vrot.lane.b32.xlu0 %v122_v7, %s694_s27  ;;  %569 = vmatpush3.msk.msra.mxu1 %vm535_vm2, %v122_v7 }
  0xe8   :  { %v567_v8 = vpop.f32.mrf.mxu0  ;;  %570 = vmatprep.subr.mxu1 %v691_v0 }
  0xe9   :  { %571 = vmatpush3.msk.msra.mxu1 %vm52_vm1, %v122_v7 }
  0xea   :  { %575 = vmatprep.subr.mxu1 %v691_v0 }
  0xeb   :  { %190 = vperm.xlu0 %604, %v122_v7  }
  0xef   :  { %606 = vset.pattern.permute.xlu0 %v697_v3 }
 0x159   :  { %v128_v9 = vpop.permute.xlu0 %127 }
 0x15a   :  { %130 = vxpose.xlu1.b32.start.end [1/1] (short) (narrow) %v128_v9, 8 }
 0x166   :  { %v191_v16 = vpop.permute.xlu0 %190 }
 0x178   :  { %605 = vset.pattern.permute.xlu1 %v695_v10 }
 0x179   :  { %163 = vperm.xlu1 %605, %v122_v7  }
 0x1d6   :  { %v146_v14 = vpop.trf.xlu1 }
 0x1d7   :  { %v196_v15 = vrot.slane %v146_v14, %v195_v13  ;;  %v169_v26 = vrot.slane %v146_v14, %v168_v25 }
 0x1d9   :  { %v197_v17 = vadd.f32 %v196_v15, %v191_v16 }
 0x1db   :  { %v199_v18 = vmin.f32 %v197_v17, 0.0  ;;  %v198_v19 = vmax.f32 %v197_v17, 0.0 }
 0x1dd   :  { %v200_v20 = vmul.f32 0.2, %v199_v18 }
 0x1df   :  { %v201_v22 = vadd.f32 %v200_v20, %v198_v19 }
 0x1e1   :  { %v202_v23 = vadd.f32 %v201_v22, %v759_v21 }
 0x1e3   :  { %v203_v24 = vsel %vm176_vm3, %v202_v23, -inf }
 0x1e4   :  { %204 = vmax.xlane.f32.xlu0 %v203_v24 }
 0x1f4   :  { %v164_v27 = vpop.permute.xlu1 %163 }
 0x1f5   :  { %v170_v28 = vadd.f32 %v169_v26, %v164_v27 }
 0x1f7   :  { %v172_v29 = vmin.f32 %v170_v28, 0.0  ;;  %v171_v30 = vmax.f32 %v170_v28, 0.0 }
 0x1f9   :  { %v173_v31 = vmul.f32 0.2, %v172_v29 }
 0x1fb   :  { %v174_v32 = vadd.f32 %v173_v31, %v171_v30 }
 0x1fd   :  { %v175_v33 = vadd.f32 %v174_v32, %v759_v21 }
 0x1ff   :  { %v177_v34 = vsel %vm176_vm3, %v175_v33, -inf }
 0x200   :  { %178 = vmax.xlane.f32.xlu1 %v177_v34 }
 0x26d   :  { %v205_v35 = vpop.xlane.xlu0 %204 }
 0x26e   :  { %v206_v36 = vsub.f32 %v202_v23, %v205_v35 }
 0x270   :  { %v207_v37 = vmul.f32 1.442695, %v206_v36 }
 0x272   :  { %607 = vpow2.f32 %v207_v37 }
 0x27f   :  { %v608_v38 = vpop.eup %607 }
 0x280   :  { %v209_v39 = vsel %vm176_vm3, %v608_v38, 0.0 }
 0x281   :  { %210 = vadd.xlane.f32.xlu0 %v209_v39 }
 0x289   :  { %v179_v40 = vpop.xlane.xlu1 %178 }
 0x28a   :  { %v180_v41 = vsub.f32 %v175_v33, %v179_v40 }
 0x28c   :  { %v181_v42 = vmul.f32 1.442695, %v180_v41 }
 0x28e   :  { %609 = vpow2.f32 %v181_v42 }
 0x29b   :  { %v610_v43 = vpop.eup %609 }
 0x29c   :  { %v183_v44 = vsel %vm176_vm3, %v610_v43, 0.0 }
 0x29d   :  { %184 = vadd.xlane.f32.xlu0 %v183_v44 }
 0x30a   :  { %v211_v45 = vpop.xlane.xlu0 %210 }
 0x30b   :  { %611 = vrcp.f32 %v211_v45 }
 0x318   :  { %v612_v46 = vpop.eup %611 }
 0x319   :  { %v213_v47 = vmul.f32 %v612_v46, %v608_v38 }
 0x31b   :  { %216 = vrot.lane.b32.xlu0 %v213_v47, %s689_s19 }
 0x326   :  { %v185_v48 = vpop.xlane.xlu0 %184 }
 0x327   :  { %613 = vrcp.f32 %v185_v48 }
 0x334   :  { %v614_v49 = vpop.eup %613 }
 0x335   :  { %v187_v50 = vmul.f32 %v614_v49, %v610_v43 }
 0x38d   :  { %v217_v51 = vpop.permute.xlu0 %216 }
 0x38e   :  { %v219_v52 = vsel %vm176_vm3, %v187_v50, %v217_v51 }
 0x38f   :  { %573 = vmatmul.mubr.msk.f32.vlgmr.msra.gmra.mxu1 %vm220_vm4, %v219_v52 }
 0x390   :  { %583 = vmatprep.mubr.msk.f32.mxu1 %vm692_vm0, %v691_v0  ;;  %576 = vmatpush3.msra.mxu1 %v308_v53 }
 0x391   :  { %577 = vmatprep.subr.mxu1 %v691_v0 }
 0x392   :  { %578 = vmatpush3.msra.mxu1 %v307_v54 }
 0x393   :  { %579 = vmatprep.subr.mxu1 %v691_v0 }
 0x394   :  { %580 = vmatpush3.msra.mxu1 %v306_v58 }
 0x395   :  { %581 = vmatprep.subr.mxu1 %v691_v0 }
 0x396   :  { %582 = vmatpush3.msra.mxu1 %v305_v59 }
 0x44f   :  { %v290_v55 = vpop.f32.mrf.mxu1 }
 0x450   :  { %v295_v56 = vmul.f32 1.442695, %v290_v55  ;;  %vm294_vm5 = vcmp.gt.f32.partialorder %v290_v55, 0.0 }
 0x451   :  { %v574_v57 = vpop.f32.mrf.mxu1 }
 0x452   :  { %615 = vpow2.f32 %v295_v56 }
 0x45f   :  { %v616_v60 = vpop.eup %615 }
 0x460   :  { %v539_v61 = vadd.f32 -1.0, %v616_v60 }
 0x462   :  { %v298_v62 = vsel %vm294_vm5, %v290_v55, %v539_v61 }
 0x463   :  { %300 = vrot.lane.b32.xlu1 %v298_v62, %s696_s1 }
 0x4d5   :  { %v301_v63 = vpop.permute.xlu1 %300 }
 0x4d6   :  { %v303_v1 = vadd.f32 %v301_v63, %v298_v62 }
 0x4d8   :  { %v304_v2 = vmul.f32 0.5, %v303_v1 }
 0x4da   :  { %584 = vmatmul.mubr.msk.f32.vlgmr.msra.gmra.mxu1 %vm52_vm1, %v304_v2 }
 0x59a   :  { %v378_v4 = vpop.f32.mrf.mxu1 }
 0x59b   :  { %383 = vrot.lane.b32.xlu0 %v378_v4, %s698_s29  ;;  %587 = vmatpush3.msra.mxu0 %v378_v4 }
 0x59c   :  { %v585_v0 = vpop.f32.mrf.mxu1 }
 0x59f   :  { %419 = vperm.xlu0 %606, %v378_v4  }
 0x60d   :  { %v384_v5 = vpop.permute.xlu0 %383 }
 0x60e   :  { %386 = vxpose.xlu0.b32.start.end [1/1] (short) (narrow) %v384_v5, 8 }
 0x61a   :  { %v420_v6 = vpop.permute.xlu0 %419 }
 0x68a   :  { %v402_v7 = vpop.trf.xlu0 }
 0x68b   :  { %v425_v8 = vrot.slane %v402_v7, %v168_v25 }
 0x68d   :  { %v426_v9 = vadd.f32 %v425_v8, %v420_v6 }
 0x68f   :  { %v428_v10 = vmin.f32 %v426_v9, 0.0  ;;  %v427_v11 = vmax.f32 %v426_v9, 0.0 }
 0x691   :  { %v429_v13 = vmul.f32 0.2, %v428_v10 }
 0x693   :  { %v430_v14 = vadd.f32 %v429_v13, %v427_v11 }
 0x695   :  { %v431_v15 = vadd.f32 %v430_v14, %v759_v21 }
 0x697   :  { %v432_v16 = vsel %vm176_vm3, %v431_v15, -inf }
 0x698   :  { %433 = vmax.xlane.f32.xlu1 %v432_v16 }
 0x721   :  { %v434_v17 = vpop.xlane.xlu1 %433 }
 0x722   :  { %v435_v18 = vsub.f32 %v431_v15, %v434_v17 }
 0x724   :  { %v436_v19 = vmul.f32 1.442695, %v435_v18 }
 0x726   :  { %617 = vpow2.f32 %v436_v19 }
 0x733   :  { %v618_v20 = vpop.eup %617 }
 0x734   :  { %v438_v22 = vsel %vm176_vm3, %v618_v20, 0.0 }
 0x735   :  { %439 = vadd.xlane.f32.xlu0 %v438_v22 }
 0x7be   :  { %v440_v12 = vpop.xlane.xlu0 %439 }
 0x7bf   :  { %619 = vrcp.f32 %v440_v12 }
 0x7cc   :  { %v620_v23 = vpop.eup %619 }
 0x7cd   :  { %v442_v24 = vmul.f32 %v620_v23, %v618_v20 }
 0x7cf   :  { %589 = vmatmul.mubr.msk.f32.vlgmr.msra.gmra.mxu0 %vm176_vm3, %v442_v24 }
 0x88f   :  { %v512_v21 = vpop.f32.mrf.mxu0 }
 0x890   :  { %v516_v25 = vmax.f32 %v512_v21, 0.0 }
 0x891   :  { %v590_v26 = vpop.f32.mrf.mxu0 }
 0x892   :  { %517 = vst.msk [vmem:[#allocation7] sm:$0xff] %vm52_vm1, %v516_v25 }
 0x893   :  { %672 = shalt.err (!%p669_p0)
}
 0x894   :  { %527 = dma.vmem_to_hbm [thread:$0]  %s525_s5, 128, %s792_s4, [#allocation4]  }
 0x895   :  { %685 = dma.done.wait [#allocation4], 128  }
 0x896   :  { %686 = vsyncadd [#allocation4], 4294967168 }
 0x897   :  { %531 = vsyncpa [#allocation3], 1 }
 0x898   :  { %532 = vsyncpa [#allocation6], 1 }
 0x899   :  { %533 = vsyncpa [#allocation4], 1 }

</bundles_post_ra>
